<compile_context>
chip_gen: v5e
topology: v5e:2x2
jax: 0.10.0
libtpu: 0.0.40
codegen_flags: <defaults>
</compile_context>

<pallas_src>
import functools

import jax
import jax.numpy as jnp
from jax.experimental import pallas as pl
from jax.experimental.pallas import tpu as pltpu

LANES = 128
SUBLANES = 8
BLOCK_ROWS = 8192            # (8192, 128) f32 block = 4 MiB per input per step
NUM_PARTIALS = 2             # leading "parallel" grid axis (both TCs on v7x)
EPS = 1e-9
_DEFAULT_MIN_PALLAS_ELEMS = 1 << 16   # below this, plain jnp is cheaper


def _loss_kernel(x_ref, d_ref, o_ref, *, block_rows, inner, rows):
    """Accumulates sum(d * log(x + eps)) into a resident (1,8,128) output block."""
    p = pl.program_id(0)                 # "parallel" slab axis
    i = pl.program_id(1)                 # "arbitrary" reduction axis
    blk = p * inner + i                  # global block index along the row axis

    @pl.when(i == 0)
    def _():
        o_ref[...] = jnp.zeros_like(o_ref)

    full_blocks = rows // block_rows     # number of fully in-bounds blocks

    # Fast path: block entirely inside the array — no mask, pure mul/log/add.
    @pl.when(blk < full_blocks)
    def _():
        contrib = d_ref[...].astype(jnp.float32) * jnp.log(
            x_ref[...].astype(jnp.float32) + EPS)
        o_ref[0] += jnp.sum(contrib.reshape(-1, SUBLANES, LANES), axis=0)

    # Tail path: at most ONE block in the whole grid crosses the row boundary.
    # Garbage rows past the array may produce NaN/Inf under log(); the select
    # (jnp.where) drops them exactly — keep it a select, not a multiply.
    if rows % block_rows != 0:
        @pl.when(blk == full_blocks)
        def _():
            x = x_ref[...].astype(jnp.float32)
            d = d_ref[...].astype(jnp.float32)
            contrib = d * jnp.log(x + EPS)
            row = jax.lax.broadcasted_iota(jnp.int32, (block_rows, LANES), 0)
            row = row + blk * block_rows
            contrib = jnp.where(row < rows, contrib, 0.0)
            o_ref[0] += jnp.sum(contrib.reshape(-1, SUBLANES, LANES), axis=0)


def pallas_loss(x, d, *, min_pallas_elems=_DEFAULT_MIN_PALLAS_ELEMS):
    """loss = -(d * log(x + 1e-9)).sum() as a float32 scalar."""
    assert x.shape == d.shape
    xf = x.reshape(-1)
    df = d.reshape(-1)
    n = xf.shape[0]

    # Small-input fast path: pipeline warm-up costs more than the XLA reduction.
    if n < max(min_pallas_elems, SUBLANES * LANES):
        return -jnp.sum(df.astype(jnp.float32) * jnp.log(xf.astype(jnp.float32) + EPS))

    # Handle the (<128-element) lane remainder with a tiny jnp sum — no padding,
    # no full-array copy. For typical NCHW products n % 128 == 0 and the
    # reshape below is a free bitcast.
    rem = n % LANES
    n_main = n - rem
    rows = n_main // LANES
    tail_sum = None
    if rem:
        x_tail = xf[n_main:].astype(jnp.float32)
        d_tail = df[n_main:].astype(jnp.float32)
        tail_sum = jnp.sum(d_tail * jnp.log(x_tail + EPS))
        xf = xf[:n_main]
        df = df[:n_main]

    x2 = xf.reshape(rows, LANES)
    d2 = df.reshape(rows, LANES)

    # Block rows: as large as possible (≤ BLOCK_ROWS), multiple of 8, ≤ rows.
    block_rows = min(BLOCK_ROWS, (rows // SUBLANES) * SUBLANES)
    total_blocks = pl.cdiv(rows, block_rows)
    inner = pl.cdiv(total_blocks, NUM_PARTIALS)

    kernel = functools.partial(
        _loss_kernel, block_rows=block_rows, inner=inner, rows=rows)

    def in_map(p, i):
        # Global block index; clamp so a (single) excess block of an odd split
        # never DMAs out of bounds — the kernel skips its contribution anyway.
        return (jnp.minimum(p * inner + i, total_blocks - 1), 0)

    bytes_accessed = (n_main * (x2.dtype.itemsize + d2.dtype.itemsize)
                      + NUM_PARTIALS * SUBLANES * LANES * 4)

    partials = pl.pallas_call(
        kernel,
        out_shape=jax.ShapeDtypeStruct((NUM_PARTIALS, SUBLANES, LANES), jnp.float32),
        grid_spec=pltpu.PrefetchScalarGridSpec(
            num_scalar_prefetch=0,
            grid=(NUM_PARTIALS, inner),
            in_specs=[
                pl.BlockSpec((block_rows, LANES), in_map),
                pl.BlockSpec((block_rows, LANES), in_map),
            ],
            out_specs=pl.BlockSpec((1, SUBLANES, LANES), lambda p, i: (p, 0, 0)),
        ),
        compiler_params=pltpu.CompilerParams(
            dimension_semantics=("parallel", "arbitrary"),
            vmem_limit_bytes=32 * 1024 * 1024,
        ),
        cost_estimate=pl.CostEstimate(
            flops=2 * n_main,
            transcendentals=n_main,
            bytes_accessed=bytes_accessed,
        ),
    )(x2, d2)

    # Single cross-lane reduce + negation on a tiny (2, 8, 128) array.
    total = jnp.sum(partials)
    if tail_sum is not None:
        total = total + tail_sum
    return -total


if __name__ == "__main__":
    key = jax.random.PRNGKey(0)
    kx, kd = jax.random.split(key)
    # small NCHW-shaped inputs consistent with a segmentation loss
    x = jax.random.uniform(kx, (2, 4, 16, 16), dtype=jnp.float32,
                           minval=0.01, maxval=1.0)   # "probabilities"
    d = jax.random.uniform(kd, (2, 4, 16, 16), dtype=jnp.float32)  # "targets"

    loss = pallas_loss(x, d, min_pallas_elems=0)      # force the Pallas path
    jax.block_until_ready(loss)
    ref = -(d * jnp.log(x + EPS)).sum()
    assert jnp.allclose(loss, ref, rtol=1e-5, atol=1e-3), (loss, ref)

    # larger shape: exercises the 2-way split and the in-kernel tail-mask block
    kx2, kd2 = jax.random.split(kd)
    x2 = jax.random.uniform(kx2, (2, 4, 300, 300), dtype=jnp.float32,
                            minval=0.01, maxval=1.0)
    d2 = jax.random.uniform(kd2, (2, 4, 300, 300), dtype=jnp.float32)
    loss2 = pallas_loss(x2, d2)
    jax.block_until_ready(loss2)
    ref2 = -(d2 * jnp.log(x2 + EPS)).sum()
    assert abs(float(loss2) - float(ref2)) <= 1e-4 * abs(float(ref2)) + 1e-2, (loss2, ref2)

    # odd total size: exercises the <128-element jnp remainder path
    kx3, kd3 = jax.random.split(kd2)
    x3 = jax.random.uniform(kx3, (3, 5, 37, 41), dtype=jnp.float32,
                            minval=0.01, maxval=1.0)
    d3 = jax.random.uniform(kd3, (3, 5, 37, 41), dtype=jnp.float32)
    loss3 = pallas_loss(x3, d3, min_pallas_elems=0)   # force the Pallas path
    jax.block_until_ready(loss3)
    ref3 = -(d3 * jnp.log(x3 + EPS)).sum()
    assert abs(float(loss3) - float(ref3)) <= 1e-4 * abs(float(ref3)) + 1e-2, (loss3, ref3)

    print("KERNEL_OK")
</pallas_src>

<mosaic_0001>
module attributes {stable_mosaic.version = 11 : i64} {
  func.func @_loss_kernel(%arg0: i32, %arg1: i32, %arg2: memref<16x128xf32, #tpu.memory_space<vmem>>, %arg3: memref<16x128xf32, #tpu.memory_space<vmem>>, %arg4: memref<1x8x128xf32, #tpu.memory_space<vmem>>) attributes {dimension_semantics = [#tpu.dimension_semantics<parallel>, #tpu.dimension_semantics<arbitrary>], iteration_bounds = array<i64: 2, 1>, scalar_prefetch = 0 : i64, scratch_operands = 0 : i64, tpu.core_type = #tpu.core_type<tc>, window_params = [{transform_indices = @transform_0, window_bounds = array<i64: 16, 128>}, {transform_indices = @transform_1, window_bounds = array<i64: 16, 128>}, {transform_indices = @transform_2, window_bounds = array<i64: 1, 8, 128>}]} {
    %c1_i32 = arith.constant 1 : i32
    %0 = arith.muli %arg0, %c1_i32 : i32
    %1 = arith.addi %0, %arg1 : i32
    %c0_i32 = arith.constant 0 : i32
    %2 = arith.cmpi eq, %arg1, %c0_i32 : i32
    %3 = arith.extui %2 : i1 to i32
    %c0_i32_0 = arith.constant 0 : i32
    %4 = arith.cmpi ne, %3, %c0_i32_0 : i32
    scf.if %4 {
      %cst = arith.constant 0.000000e+00 : f32
      %8 = vector.broadcast %cst : f32 to vector<1x8x128xf32>
      %c0 = arith.constant 0 : index
      %c0_3 = arith.constant 0 : index
      %c0_4 = arith.constant 0 : index
      %9 = vector.load %arg4[%c0, %c0_3, %c0_4] : memref<1x8x128xf32, #tpu.memory_space<vmem>>, vector<1x8x128xf32>
      tpu.vector_store %arg4[%c0, %c0_3, %c0_4], %8 {strides = array<i32>} : memref<1x8x128xf32, #tpu.memory_space<vmem>>, vector<1x8x128xf32>,
    } else {
    }
    %c1_i32_1 = arith.constant 1 : i32
    %5 = arith.cmpi slt, %1, %c1_i32_1 : i32
    %6 = arith.extui %5 : i1 to i32
    %c0_i32_2 = arith.constant 0 : i32
    %7 = arith.cmpi ne, %6, %c0_i32_2 : i32
    scf.if %7 {
      %c0 = arith.constant 0 : index
      %c0_3 = arith.constant 0 : index
      %8 = vector.load %arg3[%c0, %c0_3] : memref<16x128xf32, #tpu.memory_space<vmem>>, vector<16x128xf32>
      %c0_4 = arith.constant 0 : index
      %c0_5 = arith.constant 0 : index
      %9 = vector.load %arg2[%c0_4, %c0_5] : memref<16x128xf32, #tpu.memory_space<vmem>>, vector<16x128xf32>
      %cst = arith.constant 9.99999971E-10 : f32
      %10 = vector.broadcast %cst : f32 to vector<16x128xf32>
      %11 = arith.addf %9, %10 : vector<16x128xf32>
      %12 = math.log %11 : vector<16x128xf32>
      %13 = arith.mulf %8, %12 : vector<16x128xf32>
      %c0_6 = arith.constant 0 : index
      %c0_7 = arith.constant 0 : index
      %c0_8 = arith.constant 0 : index
      %14 = vector.load %arg4[%c0_6, %c0_7, %c0_8] : memref<1x8x128xf32, #tpu.memory_space<vmem>>, vector<1x8x128xf32>
      %15 = vector.shape_cast %14 : vector<1x8x128xf32> to vector<8x128xf32>
      %16 = vector.shape_cast %13 : vector<16x128xf32> to vector<2x8x128xf32>
      %cst_9 = arith.constant dense<0.000000e+00> : vector<8x128xf32>
      %17 = vector.multi_reduction <add>, %16, %cst_9 [0] : vector<2x8x128xf32> to vector<8x128xf32>
      %18 = arith.addf %15, %17 : vector<8x128xf32>
      %c0_10 = arith.constant 0 : index
      %c0_11 = arith.constant 0 : index
      %c0_12 = arith.constant 0 : index
      %19 = vector.load %arg4[%c0_10, %c0_11, %c0_12] : memref<1x8x128xf32, #tpu.memory_space<vmem>>, vector<1x8x128xf32>
      %20 = vector.shape_cast %19 : vector<1x8x128xf32> to vector<8x128xf32>
      %21 = vector.shape_cast %18 : vector<8x128xf32> to vector<1x8x128xf32>
      tpu.vector_store %arg4[%c0_10, %c0_11, %c0_12], %21 {strides = array<i32>} : memref<1x8x128xf32, #tpu.memory_space<vmem>>, vector<1x8x128xf32>,
    } else {
    }
    return
  }
  func.func @transform_0(%arg0: i32, %arg1: i32) -> (i32, i32) {
    %c1_i32 = arith.constant 1 : i32
    %0 = arith.muli %arg0, %c1_i32 : i32
    %1 = arith.addi %0, %arg1 : i32
    %c0_i32 = arith.constant 0 : i32
    %2 = arith.minsi %1, %c0_i32 : i32
    %c0_i32_0 = arith.constant 0 : i32
    %c0_i32_1 = arith.constant 0 : i32
    return %2, %c0_i32_0 : i32, i32
  }
  func.func @transform_1(%arg0: i32, %arg1: i32) -> (i32, i32) {
    %c1_i32 = arith.constant 1 : i32
    %0 = arith.muli %arg0, %c1_i32 : i32
    %1 = arith.addi %0, %arg1 : i32
    %c0_i32 = arith.constant 0 : i32
    %2 = arith.minsi %1, %c0_i32 : i32
    %c0_i32_0 = arith.constant 0 : i32
    %c0_i32_1 = arith.constant 0 : i32
    return %2, %c0_i32_0 : i32, i32
  }
  func.func @transform_2(%arg0: i32, %arg1: i32) -> (i32, i32, i32) {
    %c0_i32 = arith.constant 0 : i32
    %c0_i32_0 = arith.constant 0 : i32
    %c0_i32_1 = arith.constant 0 : i32
    return %arg0, %c0_i32, %c0_i32_0 : i32, i32, i32
  }
}

</mosaic_0001>

<bundles_post_ra>
// kernel: tpu_custom_call.1
= control target key start
LH: loop header
LB: loop body
LE: loop exit
PB: predicated region body
PF: predicated region fallthrough
CT: control target
= control target key end

     0   :  { %7 = vsyncpa [#allocation3], 0  ;;  %s868_s0 = inlined_call_operand.hbm [shape: f32[16,128], index: 0, kind: input, shape index: {}]   ;;  %s869_s1 = inlined_call_operand.hbm [shape: f32[16,128], index: 1, kind: input, shape index: {}]   ;;  %s870_s2 = inlined_call_operand.hbm [shape: f32[2,8,128], index: 2, kind: output, shape index: {}]  }
   0x1   :  { %9 = vsyncpa [#allocation3 + $0x1], 0 }
   0x2   :  { %10 = vsyncpa [#allocation6], 0 }
   0x3   :  { %12 = vsyncpa [#allocation6 + $0x1], 0 }
   0x4   :  { %13 = vsyncpa [#allocation4], 0 }
   0x5   :  { %15 = vsyncpa [#allocation4 + $0x1], 0  ;;  %s695_s9 = smov 0   ;;  %s697_s10 = smov 0  }
   0x6   :  { %s699_s11 = smov 0   ;;  %s701_s12 = smov 0  }
   0x7   :  { %s703_s13 = smov 0   ;;  %s705_s14 = smov 0  }
   0x8   :  { %s707_s15 = smov 0   ;;  %s709_s16 = smov 0  }
   0x9 LB: > { %s387_s17 = sadd.s32 4294967295, %s673_s16   ;;  %s388_s18 = sadd.s32 4294967294, %s673_s16   ;;  %s673_s16 = sphi %s709_s16, %s21_s16   ;;  %s669_s15 = sphi %s707_s15, %s882_s15   ;;  %s665_s14 = sphi %s705_s14, %s881_s14   ;;  %s661_s13 = sphi %s703_s13, %s858_s13   ;;  %s657_s12 = sphi %s701_s12, %s880_s12   ;;  %s653_s11 = sphi %s699_s11, %s879_s11   ;;  %s649_s10 = sphi %s697_s10, %s878_s10   ;;  %s645_s9 = sphi %s695_s9, %s877_s9  }
   0xa   : > { %s33_s19 = sadd.s32 1, %s669_s15  ;;  %p642_p1 = scmp.ne.s32.totalorder %s661_s13, 0 }
   0xb   : > { %p35_p0 = scmp.ge.s32.totalorder %s33_s19, 2  ;;  %p54_p2 = scmp.eq.s32.totalorder %s673_s16, 0 }
   0xc   : > { %p59_p3 = scmp.ne.s32.totalorder %s661_s13, %s657_s12  ;;  %p60_p5 = scmp.eq.s32.totalorder %s387_s17, 0 }
   0xd   : > { %s884_s19 = smov (%p35_p0, %s33_s19), 0  ;;  %p741_p4 = por %p642_p1, %p54_p2 }
   0xe   : > { %p745_p6 = por %p60_p5, %p59_p3  ;;  %s101_s22 = ssub.s32 %s669_s15, %s884_s19 }
   0xf   : > { %p102_p7 = scmp.eq.s32.totalorder %s101_s22, 0  ;;  %s104_s23 = sadd.s32 1, %s653_s11 }
  0x10   : > { %p114_p8 = scmp.ne.s32.totalorder %s653_s11, %s649_s10  ;;  %p115_p9 = scmp.eq.s32.totalorder %s387_s17, 1 }
  0x11   : > { %s753_s24 = scalar_select %p102_p7, %s653_s11, %s104_s23  }
  0x12   : > { %p120_p10 = scmp.ne.s32.totalorder %s649_s10, %s645_s9  ;;  %p121_p11 = scmp.eq.s32.totalorder %s388_s18, 1 }
  0x13   : > { %p759_p12 = por %p115_p9, %p114_p8  ;;  %p390_p13 = scmp.ge.s32.totalorder %s673_s16, 2 }
  0x14   : > { %p764_p0 = por %p121_p11, %p120_p10  ;;  %p425_p1 = scmp.lt.s32.totalorder %s673_s16, 2 }
  0x15   : > { %s154_s29 = sshll.u32 %s868_s0, 4  ;;  %s675_s30 = smov [#allocation2]   ;;  %s155_s29 = int_to_ptr.hbm [resolvable:$true] %s154_s29 }
  0x16   : > { %s156_s3 = sshll.u32 %s675_s30, 4  ;;  %p774_p2 = pnand %p425_p1, %p741_p4  ;;  %s157_s3 = int_to_ptr.vmem [resolvable:$true] %s156_s3 }
  0x17   : > { %p397_p3 = scmp.ge.s32.totalorder %s673_s16, 1  ;;  %p189_p5 = scmp.lt.s32.totalorder %s673_s16, 3 }
  0x18   : > { %s506_s5 = sshra.s32 %s155_s29, 4  ;;  %p510_p8 = pneg %p774_p2  ;;  %s507_s5 = int_to_ptr.hbm [resolvable:$true] %s506_s5 }
  0x19   : > { %s508_s6 = scalar_lea.hbm %s507_s5, 16  ;;  %s513_s12 = scalar_lea.hbm %s868_s0, 16 }
  0x1a   : > { %p509_p7 = scmp.ne.s32.totalorder %s507_s5, %s508_s6  ;;  %p515_p4 = scmp.lt.s32.totalorder %s513_s12, %s508_s6 }
  0x1c   : > { %p511_p9 = pnand %p510_p8, %p509_p7 }
  0x1e   : > { %p512_p10 = pneg %p511_p9 }
  0x20   : > { %p517_p11 = pnand %p515_p4, %p512_p10 }
  0x22   : > { %520 = shalt.err (!%p517_p11)
}
  0x23   : > { %s676_s17 = smov 128   ;;  %s677_s18 = smov 8  }
  0x24   : > { %417 = dma.hbm_to_vmem [thread:$0]  (!%p774_p2), %s155_s29, 256, %s157_s3, [#allocation3], %s676_s17, %s676_s17, %s677_s18  }
  0x25   : > { %p794_p1 = pnand %p397_p3, %p189_p5  ;;  %s179_s27 = sshll.u32 %s869_s1, 4  ;;  %s180_s27 = int_to_ptr.hbm [resolvable:$true] %s179_s27 }
  0x26   : > { %s678_s28 = smov [#allocation5]   ;;  %s536_s5 = sshra.s32 %s180_s27, 4  ;;  %s537_s5 = int_to_ptr.hbm [resolvable:$true] %s536_s5 }
  0x27   : > { %s181_s30 = sshll.u32 %s678_s28, 4  ;;  %s538_s6 = scalar_lea.hbm %s537_s5, 16  ;;  %s182_s30 = int_to_ptr.vmem [resolvable:$true] %s181_s30 }
  0x28   : > { %p539_p7 = scmp.ne.s32.totalorder %s537_s5, %s538_s6  ;;  %s543_s7 = scalar_lea.hbm %s869_s1, 16 }
  0x29   : > { %p545_p3 = scmp.lt.s32.totalorder %s543_s7, %s538_s6 }
  0x2a   : > { %p541_p9 = pnand %p539_p7, %p510_p8 }
  0x2c   : > { %p542_p10 = pneg %p541_p9 }
  0x2e   : > { %p547_p5 = pnand %p545_p3, %p542_p10 }
  0x30   : > { %550 = shalt.err (!%p547_p5)
}
  0x31   : > { %420 = dma.hbm_to_vmem [thread:$0]  (!%p774_p2), %s180_s27, 256, %s182_s30, [#allocation6], %s676_s17, %s676_s17, %s677_s18  }
  0x32   : > { %193 = sbr.rel (%p794_p1) target bundleno = 100 (0x64), region = 28  ;;  %s195_s8 = sand.u32 (!%p794_p1), 1, %s661_s13  }
  0x33   : > { %s398_s12 = sshll.u32 (!%p794_p1), %s195_s8, 4  ;;  %s196_s22 = scalar_lea.sflag (!%p794_p1), [#allocation3], %s195_s8 }
  0x34   : > { %s199_s23 = scalar_lea.vmem (!%p794_p1), [#allocation2], %s398_s12 }
  0x37   : > { %631 = dma.done.wait (%p745_p6), %s196_s22, 256  }
  0x38   : > { %633 = vsyncadd (%p745_p6), %s196_s22, 4294967040  ;;  %s206_s28 = scalar_lea.sflag [#allocation6], %s195_s8  ;;  %s209_s5 = scalar_lea.vmem [#allocation5], %s398_s12 }
  0x39   : > { %635 = dma.done.wait (%p745_p6), %s206_s28, 256  }
  0x3a   : > { %637 = vsyncadd (%p745_p6), %s206_s28, 4294967040  ;;  %s233_s4 = sand.u32 1, %s649_s10   ;;  %v679_v0 = vmov 0.0   ;;  %p401_p2 = scmp.ge.s32.totalorder %s665_s14, 1 }
  0x3b   : > { %s400_s17 = sshll.u32 %s233_s4, 3 }
  0x3c   : > { %s235_s18 = scalar_lea.vmem [#allocation7], %s400_s17  ;;  %253 = sbr.rel (%p401_p2) target bundleno = 85 (0x55), region = 44 }
  0x3d   : > { %249 = vst [vmem:[%s235_s18] sm:$0xff] %v679_v0 }
  0x41   : > { %v256_v1 = vld [vmem:[%s199_s23] sm:$0xff]  ;;  %v257_v2 = vld [vmem:[%s199_s23 + $0x8] sm:$0xff] }
  0x42   : > { %v258_v3 = vadd.f32 1e-09, %v256_v1  ;;  %v259_v4 = vadd.f32 1e-09, %v257_v2  ;;  %v254_v6 = vld [vmem:[%s209_s5] sm:$0xff]  ;;  %v255_v8 = vld [vmem:[%s209_s5 + $0x8] sm:$0xff] }
  0x44   : > { %502 = vlog2.f32 %v258_v3  ;;  %v266_v13 = vld [vmem:[%s235_s18] sm:$0xff] }
  0x45   : > { %504 = vlog2.f32 %v259_v4 }
  0x4a   : > { %v503_v5 = vpop.eup %502 }
  0x4b   : > { %v505_v7 = vpop.eup %504  ;;  %v261_v9 = vmul.f32 0.6931472, %v503_v5 }
  0x4c   : > { %v263_v10 = vmul.f32 0.6931472, %v505_v7 }
  0x4d   : > { %v264_v11 = vmul.f32 %v261_v9, %v254_v6 }
  0x4e   : > { %v265_v12 = vmul.f32 %v263_v10, %v255_v8 }
  0x50   : > { %v267_v14 = vadd.f32 %v265_v12, %v264_v11 }
  0x52   : > { %v268_v15 = vadd.f32 %v267_v14, %v266_v13 }
  0x54   : > { %269 = vst [vmem:[%s235_s18] sm:$0xff] %v268_v15 }
  0x55 PF: > { %s403_s21 = sshll.u32 %s665_s14, 3  ;;  %s283_s6 = sshll.u32 %s235_s18, 4  ;;  %s284_s6 = int_to_ptr.vmem [resolvable:$true] %s283_s6 }
  0x56   : > { %s281_s30 = scalar_lea.hbm %s870_s2, %s403_s21  ;;  %s271_s3 = scalar_lea.sflag [#allocation4], %s233_s4 }
  0x57   : > { %s285_s29 = sshll.u32 %s281_s30, 4  ;;  %s586_s14 = scalar_lea.hbm %s870_s2, 16  ;;  %s286_s29 = int_to_ptr.hbm [resolvable:$true] %s285_s29 }
  0x58   : > { %s580_s7 = sshra.s32 %s286_s29, 4  ;;  %s581_s7 = int_to_ptr.hbm [resolvable:$true] %s580_s7 }
  0x59   : > { %s582_s8 = scalar_lea.hbm %s581_s7, 8  ;;  %p587_p11 = scmp.lt.s32.totalorder %s581_s7, %s870_s2 }
  0x5a   : > { %p583_p6 = scmp.ne.s32.totalorder %s581_s7, %s582_s8  ;;  %p588_p1 = scmp.lt.s32.totalorder %s586_s14, %s582_s8 }
  0x5c   : > { %p584_p8 = pnand %p583_p6, %p759_p12  ;;  %p589_p7 = por %p588_p1, %p587_p11 }
  0x5e   : > { %p585_p4 = pneg %p584_p8 }
  0x60   : > { %p590_p9 = pnand %p589_p7, %p585_p4 }
  0x62   : > { %593 = shalt.err (!%p590_p9)
}
  0x63   : > { %412 = dma.vmem_to_hbm [thread:$0]  (%p759_p12), %s284_s6, 128, %s286_s29, %s271_s3  }
  0x64 PF: > { %s297_s5 = sand.u32 1, %s645_s9   ;;  %p422_p10 = pnand %p390_p13, %p764_p0 }
  0x65   : > { %s298_s4 = scalar_lea.sflag [#allocation4], %s297_s5 }
  0x66   : > { %p423_p3 = pneg %p422_p10 }
  0x68   : > { %639 = dma.done.wait (%p423_p3), %s298_s4, 128  }
  0x69   : > { %641 = vsyncadd (%p423_p3), %s298_s4, 4294967168  ;;  %s21_s16 = sadd.s32 1, %s673_s16   ;;  %s877_s9 = smov %s649_s10 }
  0x6a   : > { %p18_p5 = scmp.ge.s32.totalorder %s21_s16, 4   ;;  %s878_s10 = smov %s653_s11 }
  0x6b   : > { %s879_s11 = smov %s753_s24  ;;  %s880_s12 = smov %s661_s13 }
  0x6c   : > { %s858_s13 = smov 0   ;;  %s881_s14 = smov %s669_s15 }
  0x6d   : > { %s882_s15 = smov %s884_s19  ;;  %20 = sbr.rel (!%p18_p5) target bundleno = 9 (0x9), region = 94 }
  0x72   :  { %304 = vsyncpa [#allocation3], 1 }
  0x73   :  { %306 = vsyncpa [#allocation3 + $0x1], 1 }
  0x74   :  { %307 = vsyncpa [#allocation6], 1 }
  0x75   :  { %309 = vsyncpa [#allocation6 + $0x1], 1 }
  0x76   :  { %310 = vsyncpa [#allocation4], 1 }
  0x77   :  { %312 = vsyncpa [#allocation4 + $0x1], 1 }

</bundles_post_ra>
